<compile_context>
chip_gen: v6e
topology: v6e:2x2x1
jax: 0.10.0
libtpu: 0.0.40
codegen_flags: <defaults>
</compile_context>

<pallas_src>
import jax
import jax.numpy as jnp
from jax.experimental import pallas as pl
from jax.experimental.pallas import tpu as pltpu


def _mlp_kernel(x_ref, w1_ref, b1_ref, w2_ref, b2_ref, w3_ref, b3_ref, o_ref):
    """One (TB, 800) batch tile -> one (TB, 1) output tile."""
    x = x_ref[...]                                                     # (TB, 800)
    # Layer 1 (800 -> 64): MXU matmul, f32 accumulation; bias + ReLU on the VPU.
    h1 = jnp.dot(x, w1_ref[...], preferred_element_type=jnp.float32) + b1_ref[...]
    h1 = jnp.maximum(h1, 0.0)                                          # (TB, 64) f32
    # Layer 2 (64 -> 32): keep the MXU on its native input dtype (bf16 on the
    # fast path); accumulation stays f32.
    h1 = h1.astype(w2_ref.dtype)
    h2 = jnp.dot(h1, w2_ref[...], preferred_element_type=jnp.float32) + b2_ref[...]
    h2 = jnp.maximum(h2, 0.0)                                          # (TB, 32) f32
    # Layer 3 (32 -> 1): degenerate N=1 matmul -> VPU multiply + lane reduction
    # (keeps the MXU free; the XLU reduce hides under the x DMA).
    out = jnp.sum(h2 * w3_ref[...], axis=-1, keepdims=True) + b3_ref[...]
    o_ref[...] = out.astype(o_ref.dtype)                               # (TB, 1)


def _tpu_generation():
    """Best-effort TPU generation detection; None -> conservative defaults."""
    try:
        kind = jax.devices()[0].device_kind.lower()
    except Exception:
        return None
    if "v7" in kind or "7x" in kind:
        return "v7x"
    if "v6" in kind:
        return "v6e"
    if "v5" in kind and ("lite" in kind or "5e" in kind):
        return "v5e"
    return None


# Per-generation (max TB, vmem_limit_bytes), keyed by the x itemsize.
# VMEM budget per config (double-buffered):
#     2 * TB * 896 * itemsize        x tiles (800 lanes pad to 896)
#   + 2 * TB * 128 * 4               lane-padded (TB, 1) output buffers
#   + ~3 * TB * 128 * 4              f32 h1/h2/temps
#   + < 2 MiB                        VMEM-resident weights / biases
# e.g. v7x bf16 TB=4096 -> ~27 MiB (limit 44 MiB, 64 MiB/TC physical);
#      v6e f32  TB=4096 -> ~40 MiB and bf16 TB=8192 -> ~52 MiB (128 MiB VMEM);
#      v5e f32  TB=2048 -> ~24 MiB.
_TILE_TABLE = {
    "v5e": {4: (2048, 48 << 20), 2: (4096, 48 << 20)},   # ~0.82 TB/s HBM
    "v6e": {4: (4096, 80 << 20), 2: (8192, 80 << 20)},   # ~1.4 TB/s HBM
    "v7x": {4: (2048, 44 << 20), 2: (4096, 44 << 20)},   # 64 MiB/TC, ~3.2 TB/s
    None:  {4: (1024, 32 << 20), 2: (2048, 32 << 20)},   # unknown: conservative
}


def domain_critic_forward(x, params, *, matmul_dtype=jnp.bfloat16,
                          block_b=None, x_buffers=2):
    """Forward pass of DomainCritic.

    x: [B, 800].  params: dict of w1,b1,w2,b2,w3,b3 (w: [in, out]).
    matmul_dtype: dtype of the x/w1/w2 MXU operands (default bf16 fast path;
        jnp.float32 for a bit-exact match of the f32 reference).
    block_b: optional batch-tile override (rounded to a multiple of 8).
    x_buffers: pipeline depth of the streamed x tiles (try 3 on v7x).
    """
    B, D = x.shape
    assert D == 800, D

    if x.dtype != matmul_dtype:
        x = x.astype(matmul_dtype)            # ideally fused into x's producer
    w1 = params["w1"].astype(matmul_dtype)
    w2 = params["w2"].astype(matmul_dtype)
    b1 = params["b1"].reshape(1, 64).astype(jnp.float32)
    b2 = params["b2"].reshape(1, 32).astype(jnp.float32)
    w3 = params["w3"].reshape(1, 32).astype(jnp.float32)   # row vector for VPU reduce
    b3 = params["b3"].reshape(1, 1).astype(jnp.float32)

    itemsize = jnp.dtype(x.dtype).itemsize
    cfg = _TILE_TABLE.get(_tpu_generation(), _TILE_TABLE[None])
    max_tb, vmem_limit = cfg.get(itemsize, cfg[4])

    # Batch tiling: sublane-align, cap at the per-generation TB, honour a
    # (rounded) caller override, and keep at least two grid steps so both v7x
    # TensorCores participate.  Padded rows compute garbage-but-finite values
    # and are sliced off below.
    b_pad = 8 * pl.cdiv(B, 8)
    tb = min(max_tb, b_pad)
    if block_b is not None:
        tb = min(tb, max(8, (int(block_b) // 8) * 8))
    if b_pad >= 16 and pl.cdiv(b_pad, tb) < 2:
        tb = max(8, ((b_pad // 2) // 8) * 8)
    num_tiles = pl.cdiv(b_pad, tb)
    b_pad = tb * num_tiles
    if b_pad != B:
        x = jnp.pad(x, ((0, b_pad - B), (0, 0)))

    cost = pl.CostEstimate(
        flops=2 * b_pad * (800 * 64 + 64 * 32 + 32),
        transcendentals=0,
        bytes_accessed=int(
            b_pad * 800 * itemsize
            + (w1.size + w2.size) * itemsize
            + (b1.size + b2.size + w3.size + b3.size) * 4
            + b_pad * 4),
    )

    x_spec_kwargs = {}
    if x_buffers != 2:                         # deeper pipelining on request (v7x)
        x_spec_kwargs["pipeline_mode"] = pl.Buffered(int(x_buffers))
    const2d = lambda a: pl.BlockSpec(a.shape, lambda i: (0, 0))   # VMEM-resident

    out = pl.pallas_call(
        _mlp_kernel,
        out_shape=jax.ShapeDtypeStruct((b_pad, 1), jnp.float32),
        grid=(num_tiles,),
        in_specs=[
            pl.BlockSpec((tb, 800), lambda i: (i, 0), **x_spec_kwargs),  # streamed
            const2d(w1), const2d(b1),
            const2d(w2), const2d(b2),
            const2d(w3), const2d(b3),
        ],
        out_specs=pl.BlockSpec((tb, 1), lambda i: (i, 0)),
        compiler_params=pltpu.CompilerParams(
            dimension_semantics=("parallel",),   # v7x: shard batch tiles over 2 TCs
            vmem_limit_bytes=vmem_limit,
        ),
        cost_estimate=cost,
    )(x, w1, b1, w2, b2, w3, b3)

    return out[:B] if b_pad != B else out


def init_params(key):
    """Mimics PyTorch nn.Linear default init: U(-1/sqrt(fan_in), 1/sqrt(fan_in))."""
    dims = [(800, 64), (64, 32), (32, 1)]
    params = {}
    for i, (fan_in, fan_out) in enumerate(dims, start=1):
        key, kw, kb = jax.random.split(key, 3)
        bound = 1.0 / jnp.sqrt(fan_in)
        params[f"w{i}"] = jax.random.uniform(
            kw, (fan_in, fan_out), jnp.float32, minval=-bound, maxval=bound)
        params[f"b{i}"] = jax.random.uniform(
            kb, (1, fan_out), jnp.float32, minval=-bound, maxval=bound)
    return params


def _reference(x, p):
    h1 = jnp.maximum(x @ p["w1"] + p["b1"], 0.0)
    h2 = jnp.maximum(h1 @ p["w2"] + p["b2"], 0.0)
    return h2 @ p["w3"] + p["b3"]


if __name__ == "__main__":
    key = jax.random.PRNGKey(0)
    k_params, k_x1, k_x2 = jax.random.split(key, 3)
    params = init_params(k_params)

    # Case 1: exact f32 path, small aligned batch, strict tolerance.
    # (B=16 also exercises the grid>=2 split: two 8-row tiles.)
    B = 16
    x = jax.random.normal(k_x1, (B, 800), dtype=jnp.float32)
    ref = _reference(x, params)
    out_f32 = jax.block_until_ready(
        domain_critic_forward(x, params, matmul_dtype=jnp.float32))
    assert out_f32.shape == (B, 1), out_f32.shape
    assert jnp.allclose(out_f32, ref, atol=2e-4, rtol=2e-4), "f32 mismatch vs reference"

    # Case 2: default bf16 fast path (x/w1/w2 bf16, f32 accumulation), looser tol.
    out_bf16 = jax.block_until_ready(domain_critic_forward(x, params))
    assert out_bf16.shape == (B, 1), out_bf16.shape
    assert jnp.allclose(out_bf16, ref, atol=5e-2, rtol=5e-2), "bf16 path out of tolerance"

    # Case 3: batch not a multiple of the tile / sublane size (padding path),
    # with a deliberately non-aligned block_b override (rounded down to 16).
    B2 = 21
    x2 = jax.random.normal(k_x2, (B2, 800), dtype=jnp.float32)
    ref2 = _reference(x2, params)
    out2 = jax.block_until_ready(
        domain_critic_forward(x2, params, matmul_dtype=jnp.float32, block_b=17))
    assert out2.shape == (B2, 1), out2.shape
    assert jnp.allclose(out2, ref2, atol=2e-4, rtol=2e-4), "padded-batch mismatch"

    print("KERNEL_OK")
</pallas_src>

<mosaic_0001>
module attributes {stable_mosaic.version = 11 : i64} {
  func.func @_mlp_kernel(%arg0: i32, %arg1: memref<8x800xf32, #tpu.memory_space<vmem>>, %arg2: memref<800x64xf32, #tpu.memory_space<vmem>>, %arg3: memref<1x64xf32, #tpu.memory_space<vmem>>, %arg4: memref<64x32xf32, #tpu.memory_space<vmem>>, %arg5: memref<1x32xf32, #tpu.memory_space<vmem>>, %arg6: memref<1x32xf32, #tpu.memory_space<vmem>>, %arg7: memref<1x1xf32, #tpu.memory_space<vmem>>, %arg8: memref<8x1xf32, #tpu.memory_space<vmem>>) attributes {dimension_semantics = [#tpu.dimension_semantics<parallel>], iteration_bounds = array<i64: 2>, scalar_prefetch = 0 : i64, scratch_operands = 0 : i64, tpu.core_type = #tpu.core_type<tc>, window_params = [{transform_indices = @transform_0, window_bounds = array<i64: 8, 800>}, {pipeline_mode = #tpu.pipeline_mode<synchronous>, transform_indices = @transform_1, window_bounds = array<i64: 800, 64>}, {pipeline_mode = #tpu.pipeline_mode<synchronous>, transform_indices = @transform_2, window_bounds = array<i64: 1, 64>}, {pipeline_mode = #tpu.pipeline_mode<synchronous>, transform_indices = @transform_3, window_bounds = array<i64: 64, 32>}, {pipeline_mode = #tpu.pipeline_mode<synchronous>, transform_indices = @transform_4, window_bounds = array<i64: 1, 32>}, {pipeline_mode = #tpu.pipeline_mode<synchronous>, transform_indices = @transform_5, window_bounds = array<i64: 1, 32>}, {pipeline_mode = #tpu.pipeline_mode<synchronous>, transform_indices = @transform_6, window_bounds = array<i64: 1, 1>}, {transform_indices = @transform_7, window_bounds = array<i64: 8, 1>}]} {
    %c0 = arith.constant 0 : index
    %c0_0 = arith.constant 0 : index
    %0 = vector.load %arg1[%c0, %c0_0] : memref<8x800xf32, #tpu.memory_space<vmem>>, vector<8x800xf32>
    %c0_1 = arith.constant 0 : index
    %c0_2 = arith.constant 0 : index
    %1 = vector.load %arg2[%c0_1, %c0_2] : memref<800x64xf32, #tpu.memory_space<vmem>>, vector<800x64xf32>
    %cst = arith.constant dense<0.000000e+00> : vector<8x64xf32>
    %2 = tpu.matmul %0, %1, %cst {dimension_numbers = #tpu.dot_dimension_numbers<[1], [0], [0], [1], [0, 0, 1, 1], [], []>} : vector<8x800xf32>, vector<800x64xf32>, vector<8x64xf32> -> vector<8x64xf32>
    %c0_3 = arith.constant 0 : index
    %c0_4 = arith.constant 0 : index
    %3 = vector.load %arg3[%c0_3, %c0_4] : memref<1x64xf32, #tpu.memory_space<vmem>>, vector<1x64xf32>
    %4 = vector.broadcast %3 : vector<1x64xf32> to vector<8x64xf32>
    %5 = arith.addf %2, %4 : vector<8x64xf32>
    %cst_5 = arith.constant 0.000000e+00 : f32
    %6 = vector.broadcast %cst_5 : f32 to vector<8x64xf32>
    %7 = arith.maximumf %5, %6 : vector<8x64xf32>
    %c0_6 = arith.constant 0 : index
    %c0_7 = arith.constant 0 : index
    %8 = vector.load %arg4[%c0_6, %c0_7] : memref<64x32xf32, #tpu.memory_space<vmem>>, vector<64x32xf32>
    %cst_8 = arith.constant dense<0.000000e+00> : vector<8x32xf32>
    %9 = tpu.matmul %7, %8, %cst_8 {dimension_numbers = #tpu.dot_dimension_numbers<[1], [0], [0], [1], [0, 0, 1, 1], [], []>} : vector<8x64xf32>, vector<64x32xf32>, vector<8x32xf32> -> vector<8x32xf32>
    %c0_9 = arith.constant 0 : index
    %c0_10 = arith.constant 0 : index
    %10 = vector.load %arg5[%c0_9, %c0_10] : memref<1x32xf32, #tpu.memory_space<vmem>>, vector<1x32xf32>
    %11 = vector.broadcast %10 : vector<1x32xf32> to vector<8x32xf32>
    %12 = arith.addf %9, %11 : vector<8x32xf32>
    %cst_11 = arith.constant 0.000000e+00 : f32
    %13 = vector.broadcast %cst_11 : f32 to vector<8x32xf32>
    %14 = arith.maximumf %12, %13 : vector<8x32xf32>
    %c0_12 = arith.constant 0 : index
    %c0_13 = arith.constant 0 : index
    %15 = vector.load %arg6[%c0_12, %c0_13] : memref<1x32xf32, #tpu.memory_space<vmem>>, vector<1x32xf32>
    %16 = vector.broadcast %15 : vector<1x32xf32> to vector<8x32xf32>
    %17 = arith.mulf %14, %16 : vector<8x32xf32>
    %cst_14 = arith.constant dense<0.000000e+00> : vector<8xf32>
    %18 = vector.multi_reduction <add>, %17, %cst_14 [1] : vector<8x32xf32> to vector<8xf32>
    %19 = vector.shape_cast %18 : vector<8xf32> to vector<8x1xf32>
    %c0_15 = arith.constant 0 : index
    %c0_16 = arith.constant 0 : index
    %20 = vector.load %arg7[%c0_15, %c0_16] : memref<1x1xf32, #tpu.memory_space<vmem>>, vector<1x1xf32>
    %21 = vector.broadcast %20 : vector<1x1xf32> to vector<8x1xf32>
    %22 = arith.addf %19, %21 : vector<8x1xf32>
    %c0_17 = arith.constant 0 : index
    %c0_18 = arith.constant 0 : index
    %23 = vector.load %arg8[%c0_17, %c0_18] : memref<8x1xf32, #tpu.memory_space<vmem>>, vector<8x1xf32>
    tpu.vector_store %arg8[%c0_17, %c0_18], %22 {strides = array<i32>} : memref<8x1xf32, #tpu.memory_space<vmem>>, vector<8x1xf32>,
    return
  }
  func.func @transform_0(%arg0: i32) -> (i32, i32) {
    %c0_i32 = arith.constant 0 : i32
    %c0_i32_0 = arith.constant 0 : i32
    return %arg0, %c0_i32 : i32, i32
  }
  func.func @transform_1(%arg0: i32) -> (i32, i32) {
    %c0_i32 = arith.constant 0 : i32
    %c0_i32_0 = arith.constant 0 : i32
    %c0_i32_1 = arith.constant 0 : i32
    return %c0_i32, %c0_i32_0 : i32, i32
  }
  func.func @transform_2(%arg0: i32) -> (i32, i32) {
    %c0_i32 = arith.constant 0 : i32
    %c0_i32_0 = arith.constant 0 : i32
    %c0_i32_1 = arith.constant 0 : i32
    return %c0_i32, %c0_i32_0 : i32, i32
  }
  func.func @transform_3(%arg0: i32) -> (i32, i32) {
    %c0_i32 = arith.constant 0 : i32
    %c0_i32_0 = arith.constant 0 : i32
    %c0_i32_1 = arith.constant 0 : i32
    return %c0_i32, %c0_i32_0 : i32, i32
  }
  func.func @transform_4(%arg0: i32) -> (i32, i32) {
    %c0_i32 = arith.constant 0 : i32
    %c0_i32_0 = arith.constant 0 : i32
    %c0_i32_1 = arith.constant 0 : i32
    return %c0_i32, %c0_i32_0 : i32, i32
  }
  func.func @transform_5(%arg0: i32) -> (i32, i32) {
    %c0_i32 = arith.constant 0 : i32
    %c0_i32_0 = arith.constant 0 : i32
    %c0_i32_1 = arith.constant 0 : i32
    return %c0_i32, %c0_i32_0 : i32, i32
  }
  func.func @transform_6(%arg0: i32) -> (i32, i32) {
    %c0_i32 = arith.constant 0 : i32
    %c0_i32_0 = arith.constant 0 : i32
    %c0_i32_1 = arith.constant 0 : i32
    return %c0_i32, %c0_i32_0 : i32, i32
  }
  func.func @transform_7(%arg0: i32) -> (i32, i32) {
    %c0_i32 = arith.constant 0 : i32
    %c0_i32_0 = arith.constant 0 : i32
    return %arg0, %c0_i32 : i32, i32
  }
}

</mosaic_0001>

<bundles_post_ra>
// kernel: tpu_custom_call.1
= control target key start
LH: loop header
LB: loop body
LE: loop exit
PB: predicated region body
PF: predicated region fallthrough
CT: control target
= control target key end

     0   :  { %s1070_s26 = smov 0   ;;  %s1459_s0 = inlined_call_operand.vmem [shape: f32[16,800], index: 0, kind: input, shape index: {}]   ;;  %s1460_s1 = inlined_call_operand.vmem [shape: f32[800,64], index: 1, kind: input, shape index: {}]   ;;  %s1461_s2 = inlined_call_operand.vmem [shape: f32[1,64], index: 2, kind: input, shape index: {}]   ;;  %s1462_s3 = inlined_call_operand.vmem [shape: f32[64,32], index: 3, kind: input, shape index: {}]   ;;  %s1463_s4 = inlined_call_operand.vmem [shape: f32[1,32], index: 4, kind: input, shape index: {}]   ;;  %s1464_s5 = inlined_call_operand.vmem [shape: f32[1,32], index: 5, kind: input, shape index: {}]   ;;  %s1465_s6 = inlined_call_operand.<no memory space> [shape: f32[1,1], index: 6, kind: input, shape index: {}]   ;;  %s1466_s7 = inlined_call_operand.vmem [shape: f32[16,1], index: 7, kind: output, shape index: {}]  }
   0x1   :  { %v12_v0 = vstv %s1465_s6 }
   0x2   :  { %13 = vst [vmem:[#allocation2] sm:$0x1] %v12_v0 }
   0x3 LB: > { %s842_s27 = sadd.s32 4294967295, %s1023_s26   ;;  %p846_p0 = scmp.ge.s32.totalorder %s1023_s26, 1  ;;  %s1023_s26 = sphi %s1070_s26, %s19_s26  }
   0x4   : > { %p239_p1 = scmp.lt.s32.totalorder %s1023_s26, 3 }
   0x6   : > { %p240_p2 = pnand %p846_p0, %p239_p1 }
   0x7   : > { %p1173_p3 = scmp.lt.s32.totalorder (!%p240_p2), %s842_s27, 1 }
   0x8   : > { %243 = sbr.rel (%p240_p2) target bundleno = 624 (0x270), region = 48 }
   0xd   : > { %v317_v1 = vld [vmem:[%s1460_s1 + $0xf8] sm:$0xff]  ;;  %v316_v3 = vld [vmem:[%s1460_s1 + $0xf0] sm:$0xff]  ;;  %v315_v7 = vld [vmem:[%s1460_s1 + $0xe8] sm:$0xff]  ;;  %s1469_s27 = smov (!%p1173_p3, %s842_s27), 1  ;;  %vm393_vm0 = vcmask 261120   ;;  %vm1026_vm1 = vmmov 0  }
   0xe   : > { %v301_v2 = vld [vmem:[%s1460_s1 + $0x78] sm:$0xff]  ;;  %857 = vmatprep.subr.mxu0 %v317_v1  ;;  %v300_v5 = vld [vmem:[%s1460_s1 + $0x70] sm:$0xff]  ;;  %v299_v9 = vld [vmem:[%s1460_s1 + $0x68] sm:$0xff]  ;;  %s1006_s11 = smul.u32 56, %s1469_s27  ;;  %vm693_vm2 = vcmask 523264   ;;  %vm787_vm3 = vcmask 7168  }
   0xf   : > { %v349_v4 = vld [vmem:[%s1460_s1 + $0x1f8] sm:$0xff]  ;;  %858 = vmatpush3.msra.mxu0 %v301_v2  ;;  %v348_v8 = vld [vmem:[%s1460_s1 + $0x1f0] sm:$0xff]  ;;  %v347_v11 = vld [vmem:[%s1460_s1 + $0x1e8] sm:$0xff] }
  0x10   : > { %v333_v6 = vld [vmem:[%s1460_s1 + $0x178] sm:$0xff]  ;;  %892 = vmatprep.subr.mxu1 %v349_v4  ;;  %859 = vmatprep.subr.mxu0 %v316_v3  ;;  %v332_v10 = vld [vmem:[%s1460_s1 + $0x170] sm:$0xff]  ;;  %v314_v12 = vld [vmem:[%s1460_s1 + $0xe0] sm:$0xff]  ;;  %s1259_s8 = scalar_lea.vmem %s1459_s0, %s1006_s11  ;;  %s848_s11 = sshll.u32 %s1469_s27, 3 }
  0x11   : > { %893 = vmatpush3.msra.mxu1 %v333_v6  ;;  %860 = vmatpush3.msra.mxu0 %v300_v5  ;;  %v331_v13 = vld [vmem:[%s1460_s1 + $0x168] sm:$0xff]  ;;  %v298_v14 = vld [vmem:[%s1460_s1 + $0x60] sm:$0xff]  ;;  %v313_v16 = vld [vmem:[%s1460_s1 + $0xd8] sm:$0xff]  ;;  %s278_s18 = scalar_lea.vmem %s1466_s7, %s848_s11 }
  0x12   : > { %894 = vmatprep.subr.mxu1 %v348_v8  ;;  %861 = vmatprep.subr.mxu0 %v315_v7  ;;  %v346_v15 = vld [vmem:[%s1460_s1 + $0x1e0] sm:$0xff]  ;;  %v297_v18 = vld [vmem:[%s1460_s1 + $0x58] sm:$0xff]  ;;  %v312_v20 = vld [vmem:[%s1460_s1 + $0xd0] sm:$0xff] }
  0x13   : > { %895 = vmatpush3.msra.mxu1 %v332_v10  ;;  %862 = vmatpush3.msra.mxu0 %v299_v9  ;;  %v330_v17 = vld [vmem:[%s1460_s1 + $0x160] sm:$0xff]  ;;  %v345_v19 = vld [vmem:[%s1460_s1 + $0x1d8] sm:$0xff]  ;;  %v296_v22 = vld [vmem:[%s1460_s1 + $0x50] sm:$0xff] }
  0x14   : > { %896 = vmatprep.subr.mxu1 %v347_v11  ;;  %863 = vmatprep.subr.mxu0 %v314_v12  ;;  %v329_v21 = vld [vmem:[%s1460_s1 + $0x158] sm:$0xff]  ;;  %v344_v23 = vld [vmem:[%s1460_s1 + $0x1d0] sm:$0xff]  ;;  %v311_v24 = vld [vmem:[%s1460_s1 + $0xc8] sm:$0xff] }
  0x15   : > { %897 = vmatpush3.msra.mxu1 %v331_v13  ;;  %864 = vmatpush3.msra.mxu0 %v298_v14  ;;  %v328_v25 = vld [vmem:[%s1460_s1 + $0x150] sm:$0xff]  ;;  %v295_v26 = vld [vmem:[%s1460_s1 + $0x48] sm:$0xff]  ;;  %v310_v28 = vld [vmem:[%s1460_s1 + $0xc0] sm:$0xff]  ;;  %v1025_v13 = vmov 0.0  }
  0x16   : > { %898 = vmatprep.subr.mxu1 %v346_v15  ;;  %865 = vmatprep.subr.mxu0 %v313_v16  ;;  %v343_v27 = vld [vmem:[%s1460_s1 + $0x1c8] sm:$0xff]  ;;  %v294_v30 = vld [vmem:[%s1460_s1 + $0x40] sm:$0xff]  ;;  %v309_v32 = vld [vmem:[%s1460_s1 + $0xb8] sm:$0xff] }
  0x17   : > { %899 = vmatpush3.msra.mxu1 %v330_v17  ;;  %866 = vmatpush3.msra.mxu0 %v297_v18  ;;  %v327_v29 = vld [vmem:[%s1460_s1 + $0x148] sm:$0xff]  ;;  %v342_v31 = vld [vmem:[%s1460_s1 + $0x1c0] sm:$0xff]  ;;  %v293_v34 = vld [vmem:[%s1460_s1 + $0x38] sm:$0xff] }
  0x18   : > { %900 = vmatprep.subr.mxu1 %v345_v19  ;;  %867 = vmatprep.subr.mxu0 %v312_v20  ;;  %v326_v33 = vld [vmem:[%s1460_s1 + $0x140] sm:$0xff]  ;;  %v341_v35 = vld [vmem:[%s1460_s1 + $0x1b8] sm:$0xff]  ;;  %v308_v36 = vld [vmem:[%s1460_s1 + $0xb0] sm:$0xff] }
  0x19   : > { %901 = vmatpush3.msra.mxu1 %v329_v21  ;;  %868 = vmatpush3.msra.mxu0 %v296_v22  ;;  %v325_v37 = vld [vmem:[%s1460_s1 + $0x138] sm:$0xff]  ;;  %v292_v38 = vld [vmem:[%s1460_s1 + $0x30] sm:$0xff]  ;;  %v307_v40 = vld [vmem:[%s1460_s1 + $0xa8] sm:$0xff] }
  0x1a   : > { %902 = vmatprep.subr.mxu1 %v344_v23  ;;  %869 = vmatprep.subr.mxu0 %v311_v24  ;;  %v340_v39 = vld [vmem:[%s1460_s1 + $0x1b0] sm:$0xff]  ;;  %v291_v42 = vld [vmem:[%s1460_s1 + $0x28] sm:$0xff]  ;;  %v306_v44 = vld [vmem:[%s1460_s1 + $0xa0] sm:$0xff] }
  0x1b   : > { %903 = vmatpush3.msra.mxu1 %v328_v25  ;;  %870 = vmatpush3.msra.mxu0 %v295_v26  ;;  %v324_v41 = vld [vmem:[%s1460_s1 + $0x130] sm:$0xff]  ;;  %v339_v43 = vld [vmem:[%s1460_s1 + $0x1a8] sm:$0xff]  ;;  %v290_v46 = vld [vmem:[%s1460_s1 + $0x20] sm:$0xff] }
  0x1c   : > { %904 = vmatprep.subr.mxu1 %v343_v27  ;;  %871 = vmatprep.subr.mxu0 %v310_v28  ;;  %v323_v45 = vld [vmem:[%s1460_s1 + $0x128] sm:$0xff]  ;;  %v338_v47 = vld [vmem:[%s1460_s1 + $0x1a0] sm:$0xff]  ;;  %v305_v48 = vld [vmem:[%s1460_s1 + $0x98] sm:$0xff] }
  0x1d   : > { %905 = vmatpush3.msra.mxu1 %v327_v29  ;;  %872 = vmatpush3.msra.mxu0 %v294_v30  ;;  %v322_v49 = vld [vmem:[%s1460_s1 + $0x120] sm:$0xff]  ;;  %v289_v50 = vld [vmem:[%s1460_s1 + $0x18] sm:$0xff]  ;;  %v304_v52 = vld [vmem:[%s1460_s1 + $0x90] sm:$0xff] }
  0x1e   : > { %906 = vmatprep.subr.mxu1 %v342_v31  ;;  %873 = vmatprep.subr.mxu0 %v309_v32  ;;  %v337_v51 = vld [vmem:[%s1460_s1 + $0x198] sm:$0xff]  ;;  %v288_v54 = vld [vmem:[%s1460_s1 + $0x10] sm:$0xff]  ;;  %v303_v56 = vld [vmem:[%s1460_s1 + $0x88] sm:$0xff] }
  0x1f   : > { %907 = vmatpush3.msra.mxu1 %v326_v33  ;;  %874 = vmatpush3.msra.mxu0 %v293_v34  ;;  %v321_v53 = vld [vmem:[%s1460_s1 + $0x118] sm:$0xff]  ;;  %v336_v55 = vld [vmem:[%s1460_s1 + $0x190] sm:$0xff]  ;;  %v287_v58 = vld [vmem:[%s1460_s1 + $0x8] sm:$0xff] }
  0x20   : > { %908 = vmatprep.subr.mxu1 %v341_v35  ;;  %875 = vmatprep.subr.mxu0 %v308_v36  ;;  %v320_v57 = vld [vmem:[%s1460_s1 + $0x110] sm:$0xff]  ;;  %v335_v59 = vld [vmem:[%s1460_s1 + $0x188] sm:$0xff]  ;;  %v302_v60 = vld [vmem:[%s1460_s1 + $0x80] sm:$0xff] }
  0x21   : > { %909 = vmatpush3.msra.mxu1 %v325_v37  ;;  %876 = vmatpush3.msra.mxu0 %v292_v38  ;;  %v280_v61 = vld [vmem:[%s1259_s8 + $0x8] sm:$0xff]  ;;  %v286_v62 = vld [vmem:[%s1460_s1] sm:$0xff]  ;;  %v381_v2 = vld [vmem:[%s1460_s1 + $0x2f8] sm:$0xff] }
  0x22   : > { %910 = vmatprep.subr.mxu1 %v340_v39  ;;  %877 = vmatprep.subr.mxu0 %v307_v40  ;;  %v319_v63 = vld [vmem:[%s1460_s1 + $0x108] sm:$0xff]  ;;  %v279_v0 = vld [vmem:[%s1259_s8] sm:$0xff]  ;;  %v282_v4 = vld [vmem:[%s1259_s8 + $0x18] sm:$0xff] }
  0x23   : > { %911 = vmatpush3.msra.mxu1 %v324_v41  ;;  %878 = vmatpush3.msra.mxu0 %v291_v42  ;;  %v334_v1 = vld [vmem:[%s1460_s1 + $0x180] sm:$0xff]  ;;  %v365_v5 = vld [vmem:[%s1460_s1 + $0x278] sm:$0xff]  ;;  %v281_v6 = vld [vmem:[%s1259_s8 + $0x10] sm:$0xff] }
  0x24   : > { %912 = vmatprep.subr.mxu1 %v339_v43  ;;  %879 = vmatprep.subr.mxu0 %v306_v44  ;;  %v318_v3 = vld [vmem:[%s1460_s1 + $0x100] sm:$0xff]  ;;  %v380_v7 = vld [vmem:[%s1460_s1 + $0x2f0] sm:$0xff]  ;;  %v379_v9 = vld [vmem:[%s1460_s1 + $0x2e8] sm:$0xff] }
  0x25   : > { %913 = vmatpush3.msra.mxu1 %v323_v45  ;;  %880 = vmatpush3.msra.mxu0 %v290_v46  ;;  %v364_v8 = vld [vmem:[%s1460_s1 + $0x270] sm:$0xff]  ;;  %v385_v10 = vld [vmem:[%s1460_s1 + $0x318] sm:$0xff]  ;;  %v363_v11 = vld [vmem:[%s1460_s1 + $0x268] sm:$0xff] }
  0x26   : > { %914 = vmatprep.subr.mxu1 %v338_v47  ;;  %881 = vmatprep.subr.mxu0 %v305_v48  ;;  %v378_v12 = vld [vmem:[%s1460_s1 + $0x2e0] sm:$0xff]  ;;  %v284_v14 = vld [vmem:[%s1259_s8 + $0x28] sm:$0xff]  ;;  %v384_v16 = vld [vmem:[%s1460_s1 + $0x310] sm:$0xff] }
  0x27   : > { %915 = vmatpush3.msra.mxu1 %v322_v49  ;;  %882 = vmatpush3.msra.mxu0 %v289_v50  ;;  %v362_v15 = vld [vmem:[%s1460_s1 + $0x260] sm:$0xff]  ;;  %v377_v17 = vld [vmem:[%s1460_s1 + $0x2d8] sm:$0xff]  ;;  %v383_v19 = vld [vmem:[%s1460_s1 + $0x308] sm:$0xff] }
  0x28   : > { %916 = vmatprep.subr.mxu1 %v337_v51  ;;  %883 = vmatprep.subr.mxu0 %v304_v52  ;;  %v361_v18 = vld [vmem:[%s1460_s1 + $0x258] sm:$0xff]  ;;  %v376_v20 = vld [vmem:[%s1460_s1 + $0x2d0] sm:$0xff]  ;;  %v382_v22 = vld [vmem:[%s1460_s1 + $0x300] sm:$0xff] }
  0x29   : > { %917 = vmatpush3.msra.mxu1 %v321_v53  ;;  %884 = vmatpush3.msra.mxu0 %v288_v54  ;;  %v360_v21 = vld [vmem:[%s1460_s1 + $0x250] sm:$0xff]  ;;  %v375_v23 = vld [vmem:[%s1460_s1 + $0x2c8] sm:$0xff]  ;;  %v374_v26 = vld [vmem:[%s1460_s1 + $0x2c0] sm:$0xff] }
  0x2a   : > { %918 = vmatprep.subr.mxu1 %v336_v55  ;;  %885 = vmatprep.subr.mxu0 %v303_v56  ;;  %v359_v24 = vld [vmem:[%s1460_s1 + $0x248] sm:$0xff]  ;;  %v285_v25 = vld [vmem:[%s1259_s8 + $0x30] sm:$0xff]  ;;  %v358_v27 = vld [vmem:[%s1460_s1 + $0x240] sm:$0xff] }
  0x2b   : > { %919 = vmatpush3.msra.mxu1 %v320_v57  ;;  %886 = vmatpush3.msra.mxu0 %v287_v58  ;;  %v373_v28 = vld [vmem:[%s1460_s1 + $0x2b8] sm:$0xff]  ;;  %v372_v30 = vld [vmem:[%s1460_s1 + $0x2b0] sm:$0xff]  ;;  %v371_v32 = vld [vmem:[%s1460_s1 + $0x2a8] sm:$0xff] }
  0x2c   : > { %920 = vmatprep.subr.mxu1 %v335_v59  ;;  %887 = vmatprep.subr.mxu0 %v302_v60  ;;  %v357_v29 = vld [vmem:[%s1460_s1 + $0x238] sm:$0xff]  ;;  %v356_v31 = vld [vmem:[%s1460_s1 + $0x230] sm:$0xff]  ;;  %v355_v33 = vld [vmem:[%s1460_s1 + $0x228] sm:$0xff] }
  0x2d   : > { %461 = vmatprep.mubr.f32.mxu0 %v280_v61  ;;  %888 = vmatpush3.msra.mxu0 %v286_v62  ;;  %v370_v34 = vld [vmem:[%s1460_s1 + $0x2a0] sm:$0xff]  ;;  %v369_v36 = vld [vmem:[%s1460_s1 + $0x298] sm:$0xff]  ;;  %v368_v38 = vld [vmem:[%s1460_s1 + $0x290] sm:$0xff] }
  0x2e   : > { %921 = vmatpush3.msra.mxu1 %v319_v63  ;;  %462 = vmatmul.mubr.f32.vlgmr.msra.gmra.mxu0 %v279_v0  ;;  %v354_v35 = vld [vmem:[%s1460_s1 + $0x220] sm:$0xff]  ;;  %v353_v37 = vld [vmem:[%s1460_s1 + $0x218] sm:$0xff]  ;;  %v352_v39 = vld [vmem:[%s1460_s1 + $0x210] sm:$0xff] }
  0x2f   : > { %922 = vmatprep.subr.mxu1 %v334_v1  ;;  %927 = vmatprep.subr.mxu0 %v381_v2  ;;  %v367_v40 = vld [vmem:[%s1460_s1 + $0x288] sm:$0xff]  ;;  %v366_v42 = vld [vmem:[%s1460_s1 + $0x280] sm:$0xff]  ;;  %v685_v45 = vld [vmem:[%s1462_s3 + $0x38] sm:$0xff] }
  0x30   : > { %923 = vmatpush3.msra.mxu1 %v318_v3  ;;  %531 = vmatprep.mubr.f32.mxu1 %v282_v4  ;;  %v351_v41 = vld [vmem:[%s1460_s1 + $0x208] sm:$0xff]  ;;  %v350_v43 = vld [vmem:[%s1460_s1 + $0x200] sm:$0xff]  ;;  %v684_v46 = vld [vmem:[%s1462_s3 + $0x30] sm:$0xff] }
  0x31   : > { %928 = vmatpush3.msra.mxu0 %v365_v5  ;;  %532 = vmatmul.mubr.f32.vlgmr.msra.gmra.mxu1 %v281_v6  ;;  %v283_v44 = vld [vmem:[%s1259_s8 + $0x20] sm:$0xff]  ;;  %v683_v47 = vld [vmem:[%s1462_s3 + $0x28] sm:$0xff]  ;;  %v681_v49 = vld [vmem:[%s1462_s3 + $0x18] sm:$0xff] }
  0x32   : > { %929 = vmatprep.subr.mxu0 %v380_v7  ;;  %976 = vmatprep.subr.mxu1 %v1025_v13  ;;  %v682_v48 = vld [vmem:[%s1462_s3 + $0x20] sm:$0xff]  ;;  %v680_v50 = vld [vmem:[%s1462_s3 + $0x10] sm:$0xff]  ;;  %v679_v51 = vld [vmem:[%s1462_s3 + $0x8] sm:$0xff] }
  0x33   : > { %930 = vmatpush3.msra.mxu0 %v364_v8  ;;  %977 = vmatpush3.msra.mxu1 %v385_v10  ;;  %v678_v52 = vld [vmem:[%s1462_s3] sm:$0xff] }
  0x34   : > { %931 = vmatprep.subr.mxu0 %v379_v9  ;;  %978 = vmatprep.subr.mxu1 %v1025_v13  ;;  %v849_v60 = vld [vmem:[%s1461_s2] ss:$0 sm:$0xff] }
  0x35   : > { %932 = vmatpush3.msra.mxu0 %v363_v11  ;;  %601 = vmatprep.mubr.f32.mxu0 %v284_v14  ;;  %v851_v6 = vld [vmem:[%s1463_s4] ss:$0 sm:$0xff] }
  0x36   : > { %933 = vmatprep.subr.mxu0 %v378_v12  ;;  %979 = vmatpush3.msra.mxu1 %v384_v16  ;;  %v853_v10 = vld [vmem:[%s1464_s5] ss:$0 sm:$0xff] }
  0x37   : > { %934 = vmatpush3.msra.mxu0 %v362_v15  ;;  %980 = vmatprep.subr.mxu1 %v1025_v13  ;;  %v854_v14 = vld [vmem:[#allocation2] ss:$0 sm:$0xff] }
  0x38   : > { %935 = vmatprep.subr.mxu0 %v377_v17  ;;  %981 = vmatpush3.msra.mxu1 %v383_v19 }
  0x39   : > { %936 = vmatpush3.msra.mxu0 %v361_v18  ;;  %982 = vmatprep.subr.mxu1 %v1025_v13 }
  0x3a   : > { %937 = vmatprep.subr.mxu0 %v376_v20  ;;  %983 = vmatpush3.msra.mxu1 %v382_v22 }
  0x3b   : > { %938 = vmatpush3.msra.mxu0 %v360_v21  ;;  %984 = vmatprep.mubr.msk.f32.mxu1 %vm1026_vm1, %v1025_v13 }
  0x3c   : > { %939 = vmatprep.subr.mxu0 %v375_v23  ;;  %985 = vmatmul.mubr.msk.f32.vlgmr.msra.gmra.mxu1 %vm393_vm0, %v285_v25 }
  0x3d   : > { %940 = vmatpush3.msra.mxu0 %v359_v24  ;;  %987 = vmatprep.subr.mxu1 %v1025_v13 }
  0x3e   : > { %941 = vmatprep.subr.mxu0 %v374_v26  ;;  %1003 = vmatprep.mubr.msk.f32.mxu1 %vm1026_vm1, %v1025_v13 }
  0x3f   : > { %942 = vmatpush3.msra.mxu0 %v358_v27  ;;  %988 = vmatpush3.msra.mxu1 %v685_v45 }
  0x40   : > { %943 = vmatprep.subr.mxu0 %v373_v28  ;;  %989 = vmatprep.subr.mxu1 %v1025_v13 }
  0x41   : > { %944 = vmatpush3.msra.mxu0 %v357_v29  ;;  %990 = vmatpush3.msra.mxu1 %v684_v46 }
  0x42   : > { %945 = vmatprep.subr.mxu0 %v372_v30  ;;  %991 = vmatprep.subr.mxu1 %v1025_v13 }
  0x43   : > { %946 = vmatpush3.msra.mxu0 %v356_v31  ;;  %992 = vmatpush3.msra.mxu1 %v683_v47 }
  0x44   : > { %947 = vmatprep.subr.mxu0 %v371_v32  ;;  %993 = vmatprep.subr.mxu1 %v1025_v13 }
  0x45   : > { %948 = vmatpush3.msra.mxu0 %v355_v33  ;;  %994 = vmatpush3.msra.mxu1 %v682_v48 }
  0x46   : > { %949 = vmatprep.subr.mxu0 %v370_v34  ;;  %995 = vmatprep.subr.mxu1 %v1025_v13 }
  0x47   : > { %950 = vmatpush3.msra.mxu0 %v354_v35  ;;  %996 = vmatpush3.msra.mxu1 %v681_v49 }
  0x48   : > { %951 = vmatprep.subr.mxu0 %v369_v36  ;;  %997 = vmatprep.subr.mxu1 %v1025_v13 }
  0x49   : > { %952 = vmatpush3.msra.mxu0 %v353_v37  ;;  %998 = vmatpush3.msra.mxu1 %v680_v50 }
  0x4a   : > { %953 = vmatprep.subr.mxu0 %v368_v38  ;;  %999 = vmatprep.subr.mxu1 %v1025_v13 }
  0x4b   : > { %954 = vmatpush3.msra.mxu0 %v352_v39  ;;  %1000 = vmatpush3.msra.mxu1 %v679_v51 }
  0x4c   : > { %955 = vmatprep.subr.mxu0 %v367_v40  ;;  %1001 = vmatprep.subr.mxu1 %v1025_v13 }
  0x4d   : > { %956 = vmatpush3.msra.mxu0 %v351_v41  ;;  %1002 = vmatpush3.msra.mxu1 %v678_v52 }
  0x4e   : > { %957 = vmatprep.subr.mxu0 %v366_v42 }
  0x4f   : > { %958 = vmatpush3.msra.mxu0 %v350_v43 }
  0x50   : > { %602 = vmatmul.mubr.f32.vlgmr.msra.gmra.mxu0 %v283_v44 }
  0xee   : > { %v889_v57 = vpop.f32.mrf.mxu0 }
  0xf0   : > { %v890_v58 = vpop.f32.mrf.mxu0 }
  0xf1   : > { %v924_v53 = vpop.f32.mrf.mxu1  ;;  %v891_v59 = vadd.f32 %v890_v58, %v889_v57 }
  0xf3   : > { %v925_v54 = vpop.f32.mrf.mxu1  ;;  %v464_v61 = vadd.f32 %v891_v59, %v849_v60 }
  0xf4   : > { %v926_v62 = vadd.f32 %v925_v54, %v924_v53 }
  0xf6   : > { %v534_v1 = vadd.f32 %v926_v62, %v464_v61 }
  0xfc   : > { %v673_v55 = vpop.f32.mrf.mxu1 }
  0xfe   : > { %v986_v56 = vpop.f32.mrf.mxu1 }
 0x110   : > { %v959_v63 = vpop.f32.mrf.mxu0 }
 0x112   : > { %v960_v0 = vpop.f32.mrf.mxu0 }
 0x113   : > { %v961_v2 = vadd.f32 %v960_v0, %v959_v63 }
 0x115   : > { %v604_v3 = vadd.f32 %v961_v2, %v534_v1 }
 0x117   : > { %v674_v4 = vadd.f32 %v673_v55, %v604_v3 }
 0x119   : > { %v677_v5 = vmax.f32 %v674_v4, 0.0 }
 0x11b   : > { %1004 = vmatmul.mubr.msk.f32.vlgmr.msra.gmra.mxu1 %vm693_vm2, %v677_v5 }
 0x1db   : > { %v763_v7 = vpop.f32.mrf.mxu1 }
 0x1dc   : > { %v764_v8 = vadd.f32 %v851_v6, %v763_v7 }
 0x1dd   : > { %v1005_v9 = vpop.f32.mrf.mxu1 }
 0x1de   : > { %v767_v11 = vmax.f32 %v764_v8, 0.0 }
 0x1e0   : > { %v775_v12 = vmul.f32 %v853_v10, %v767_v11 }
 0x1e2   : > { %v776_v13 = vsel %vm393_vm0, %v775_v12, 0.0 }
 0x1e3   : > { %777 = vadd.xlane.f32.xlu0 %v776_v13 }
 0x26c   : > { %v778_v15 = vpop.xlane.xlu0 %777 }
 0x26d   : > { %v786_v16 = vadd.f32 %v854_v14, %v778_v15 }
 0x26f   : > { %788 = vst.msk [vmem:[%s278_s18] sm:$0xff] %vm787_vm3, %v786_v16 }
 0x270 PF: > { %s19_s26 = sadd.s32 1, %s1023_s26  }
 0x271   : > { %p16_p4 = scmp.ge.s32.totalorder %s19_s26, 4  }
 0x273   :  { %18 = sbr.rel (!%p16_p4) target bundleno = 3 (0x3), region = 78 }

</bundles_post_ra>
